<compile_context>
chip_gen: v6e
topology: v6e:2x2x1
jax: 0.10.0
libtpu: 0.0.40
codegen_flags: <defaults>
</compile_context>

<pallas_src>
import functools

import jax
import jax.numpy as jnp
from jax.experimental import pallas as pl
from jax.experimental.pallas import tpu as pltpu


# ----------------------------------------------------------------------------
# DDPM schedules (plain JAX glue; standard classifier-free-guidance helper:
# length T+1, indexed 0..T; the forward samples t with randint(1, T) exactly
# as the reference module does, so alpha_bar[t] is always in range).
# ----------------------------------------------------------------------------
def ddpm_schedules(beta1, beta2, T):
    beta = beta1 + (beta2 - beta1) * jnp.arange(0, T + 1, dtype=jnp.float32) / T
    alpha = 1.0 - beta
    alpha_bar = jnp.cumprod(alpha)
    sigma = jnp.sqrt(beta)
    return {"beta": beta, "alpha": alpha, "alpha_bar": alpha_bar, "sigma": sigma}


# ----------------------------------------------------------------------------
# Pallas kernel: fused q_sample + eps_model (pixel MLP) + squared-error sum
# Grid = (batch, pixel_tile).  Batch axis is "parallel" (splits across
# TensorCores on multi-core chips); pixel-tile axis carries the accumulator.
# ----------------------------------------------------------------------------
def ddpm_loss_kernel(
    x_ref,      # (C, TILE_N)  clean image pixels (channel-major)
    eps_ref,    # (C, TILE_N)  true noise
    sa_ref,     # (1, 1)       sqrt(alpha_bar[t_b])
    sb_ref,     # (1, 1)       sqrt(1 - alpha_bar[t_b])
    ch_ref,     # (Hh, 1)      per-batch conditioning bias = cond @ W1c + b1
    w1_ref,     # (Hh, C)      W1x^T   (resident across the whole grid)
    w2_ref,     # (C, Hh)      W2^T    (resident)
    b2_ref,     # (C, 1)
    sse_ref,    # (1, 1)       per-batch sum of squared errors
    acc_ref,    # (C, TILE_N)  VMEM vector accumulator (pure VPU per step)
    *, hw, tile_n,
):
    j = pl.program_id(1)

    @pl.when(j == 0)
    def _():
        acc_ref[...] = jnp.zeros_like(acc_ref)

    x = x_ref[...].astype(jnp.float32)
    eps = eps_ref[...].astype(jnp.float32)

    # q_sample: x_t = sqrt(ab[t]) * x + sqrt(1 - ab[t]) * eps   (per-batch scalars)
    x_t = sa_ref[...] * x + sb_ref[...] * eps

    # eps_model: pixel-wise MLP (1x1 conv -> ReLU -> 1x1 conv).  The class/time
    # conditioning is constant over all H*W pixels of a batch element, so it
    # enters as a precomputed per-batch first-layer bias (fused w1c matmul).
    h = jnp.dot(w1_ref[...], x_t, preferred_element_type=jnp.float32)   # (Hh, TILE_N)
    h = jnp.maximum(h + ch_ref[...], 0.0)
    pred = jnp.dot(w2_ref[...], h, preferred_element_type=jnp.float32) + b2_ref[...]

    diff = pred - eps
    if hw % tile_n:  # static: only compiled in when a padded tail exists
        pix = j * tile_n + jax.lax.broadcasted_iota(jnp.int32, diff.shape, 1)
        diff = jnp.where(pix < hw, diff, 0.0)

    # elementwise vector accumulation every step; single reduce at the end
    acc_ref[...] += diff * diff

    @pl.when(j == pl.num_programs(1) - 1)
    def _():
        sse_ref[...] = jnp.sum(acc_ref[...], keepdims=True)


# ----------------------------------------------------------------------------
# Wrapper: RNG sampling (t, eps, context_mask), layout plumbing, pallas_call
# ----------------------------------------------------------------------------
def classifier_free_ddpm_loss(x, y, key, params, schedules, T, drop_prob=0.1,
                              max_tile_n=8192, stream_dtype=jnp.float32):
    B, C, H, W = x.shape
    HW = H * W
    k_t, k_eps, k_mask = jax.random.split(key, 3)

    # t ~ randint(1, T) (matches torch.randint(1, self.T, ...)); eps ~ N(0, I);
    # context_mask ~ Bernoulli(drop_prob).
    t = jax.random.randint(k_t, (B,), 1, T)
    eps = jax.random.normal(k_eps, x.shape, dtype=x.dtype)
    context_mask = jax.random.bernoulli(k_mask, drop_prob, y.shape).astype(jnp.float32)

    alpha_bar = schedules["alpha_bar"]
    sa = jnp.sqrt(alpha_bar[t]).astype(jnp.float32).reshape(B, 1, 1)
    sb = jnp.sqrt(1.0 - alpha_bar[t]).astype(jnp.float32).reshape(B, 1, 1)

    # Conditioning is per-batch, not per-pixel: dropout-masked class embedding
    # plus normalized timestep, folded through the conditioning layer once so
    # the kernel only needs a (Hh, 1) bias per batch element.
    emb = params["class_emb"][y] * (1.0 - context_mask)[:, None]        # (B, E)
    t_norm = (t.astype(jnp.float32) / float(T))[:, None]                # (B, 1)
    cond = jnp.concatenate([emb, t_norm], axis=1)                       # (B, Dc)
    cond_h = (cond @ params["w1c"] + params["b1"])[:, :, None]          # (B, Hh, 1)

    # channel-major pixel layout: NCHW -> (B, C, H*W) is a pure reshape.
    n_tiles = pl.cdiv(HW, max_tile_n)
    tile_n = pl.cdiv(pl.cdiv(HW, n_tiles), 128) * 128                   # lane-dense
    hwp = n_tiles * tile_n

    x_cm = x.reshape(B, C, HW)
    eps_cm = eps.reshape(B, C, HW)
    if hwp != HW:
        pad = ((0, 0), (0, 0), (0, hwp - HW))
        x_cm = jnp.pad(x_cm, pad)
        eps_cm = jnp.pad(eps_cm, pad)
    # Optionally stream activations as bf16 on v6e/v7x (halves remaining HBM
    # bytes; kernel upcasts to f32 before compute, so it is also safe on v5e).
    # Default f32 preserves exact reference numerics.
    x_cm = x_cm.astype(stream_dtype)
    eps_cm = eps_cm.astype(stream_dtype)

    Hh = params["w1x"].shape[1]
    w1T = params["w1x"].T                  # (Hh, C)
    w2T = params["w2"].T                   # (C, Hh)
    b2 = params["b2"].reshape(C, 1)

    kernel = functools.partial(ddpm_loss_kernel, hw=HW, tile_n=tile_n)

    sse = pl.pallas_call(
        kernel,
        out_shape=jax.ShapeDtypeStruct((B, 1, 1), jnp.float32),
        grid_spec=pltpu.PrefetchScalarGridSpec(
            num_scalar_prefetch=0,
            grid=(B, n_tiles),
            in_specs=[
                pl.BlockSpec((None, C, tile_n), lambda b, j: (b, 0, j)),   # x
                pl.BlockSpec((None, C, tile_n), lambda b, j: (b, 0, j)),   # eps
                pl.BlockSpec((None, 1, 1), lambda b, j: (b, 0, 0)),        # sqrt(ab[t])
                pl.BlockSpec((None, 1, 1), lambda b, j: (b, 0, 0)),        # sqrt(1-ab[t])
                pl.BlockSpec((None, Hh, 1), lambda b, j: (b, 0, 0)),       # cond bias
                pl.BlockSpec((Hh, C), lambda b, j: (0, 0)),                # W1x^T
                pl.BlockSpec((C, Hh), lambda b, j: (0, 0)),                # W2^T
                pl.BlockSpec((C, 1), lambda b, j: (0, 0)),                 # b2
            ],
            out_specs=pl.BlockSpec((None, 1, 1), lambda b, j: (b, 0, 0)),
            scratch_shapes=[pltpu.VMEM((C, tile_n), jnp.float32)],
        ),
        compiler_params=pltpu.CompilerParams(
            dimension_semantics=("parallel", "arbitrary"),
        ),
    )(x_cm, eps_cm, sa, sb, cond_h, w1T, w2T, b2)

    # nn.MSELoss default reduction='mean' over all elements
    return jnp.sum(sse) / float(B * C * H * W)


# ----------------------------------------------------------------------------
# Deterministic parameter initialization for the synthetic eps_model
# (the PyTorch module takes eps_model as an injected sub-module; we synthesize
#  a pixel-wise MLP / 1x1-conv network with fixed-seed weights)
# ----------------------------------------------------------------------------
def init_params(C, num_classes=10, emb_dim=7, hidden=32, seed=0):
    kp = jax.random.PRNGKey(seed)
    k0, k1, k2, k3 = jax.random.split(kp, 4)
    Dc = emb_dim + 1  # class embedding + normalized timestep
    return {
        "class_emb": jax.random.normal(k0, (num_classes, emb_dim), jnp.float32) * 0.1,
        "w1x": jax.random.normal(k1, (C, hidden), jnp.float32) * 0.2,
        "w1c": jax.random.normal(k2, (Dc, hidden), jnp.float32) * 0.2,
        "b1": jnp.zeros((hidden,), jnp.float32),
        "w2": jax.random.normal(k3, (hidden, C), jnp.float32) * 0.2,
        "b2": jnp.zeros((C,), jnp.float32),
    }


if __name__ == "__main__":
    B, C, H, W = 2, 4, 16, 16
    T = 100
    betas = (1e-4, 0.02)

    key = jax.random.PRNGKey(0)
    kx, ky, kfwd = jax.random.split(key, 3)
    x = jax.random.normal(kx, (B, C, H, W), jnp.float32)
    y = jax.random.randint(ky, (B,), 0, 10)

    schedules = ddpm_schedules(betas[0], betas[1], T)
    params = init_params(C)

    loss_fn = jax.jit(
        functools.partial(classifier_free_ddpm_loss, params=params,
                          schedules=schedules, T=T, drop_prob=0.1)
    )
    loss = loss_fn(x, y, kfwd)
    jax.block_until_ready(loss)

    # TODO(synk): `sample()` (reverse diffusion loop with classifier-free
    # guidance) is inference-time host control flow and is not implemented here.
    print("KERNEL_OK")
</pallas_src>

<mosaic_0001>
module attributes {stable_mosaic.version = 11 : i64} {
  func.func @ddpm_loss_kernel(%arg0: i32, %arg1: i32, %arg2: memref<1x4x256xf32, #tpu.memory_space<vmem>>, %arg3: memref<1x4x256xf32, #tpu.memory_space<vmem>>, %arg4: memref<1x1x1xf32, #tpu.memory_space<vmem>>, %arg5: memref<1x1x1xf32, #tpu.memory_space<vmem>>, %arg6: memref<1x32x1xf32, #tpu.memory_space<vmem>>, %arg7: memref<32x4xf32, #tpu.memory_space<vmem>>, %arg8: memref<4x32xf32, #tpu.memory_space<vmem>>, %arg9: memref<4x1xf32, #tpu.memory_space<vmem>>, %arg10: memref<1x1x1xf32, #tpu.memory_space<vmem>>, %arg11: memref<4x256xf32, #tpu.memory_space<vmem>>) attributes {dimension_semantics = [#tpu.dimension_semantics<parallel>, #tpu.dimension_semantics<arbitrary>], iteration_bounds = array<i64: 2, 1>, scalar_prefetch = 0 : i64, scratch_operands = 1 : i64, tpu.core_type = #tpu.core_type<tc>, window_params = [{transform_indices = @transform_0, window_bounds = array<i64: 1, 4, 256>}, {transform_indices = @transform_1, window_bounds = array<i64: 1, 4, 256>}, {transform_indices = @transform_2, window_bounds = array<i64: 1, 1, 1>}, {transform_indices = @transform_3, window_bounds = array<i64: 1, 1, 1>}, {transform_indices = @transform_4, window_bounds = array<i64: 1, 32, 1>}, {pipeline_mode = #tpu.pipeline_mode<synchronous>, transform_indices = @transform_5, window_bounds = array<i64: 32, 4>}, {pipeline_mode = #tpu.pipeline_mode<synchronous>, transform_indices = @transform_6, window_bounds = array<i64: 4, 32>}, {pipeline_mode = #tpu.pipeline_mode<synchronous>, transform_indices = @transform_7, window_bounds = array<i64: 4, 1>}, {transform_indices = @transform_8, window_bounds = array<i64: 1, 1, 1>}]} {
    %c0_i32 = arith.constant 0 : i32
    %0 = arith.cmpi eq, %arg1, %c0_i32 : i32
    %1 = arith.extui %0 : i1 to i32
    %c0_i32_0 = arith.constant 0 : i32
    %2 = arith.cmpi ne, %1, %c0_i32_0 : i32
    scf.if %2 {
      %cst_29 = arith.constant 0.000000e+00 : f32
      %37 = vector.broadcast %cst_29 : f32 to vector<4x256xf32>
      %c0_30 = arith.constant 0 : index
      %c0_31 = arith.constant 0 : index
      %38 = vector.load %arg11[%c0_30, %c0_31] : memref<4x256xf32, #tpu.memory_space<vmem>>, vector<4x256xf32>
      tpu.vector_store %arg11[%c0_30, %c0_31], %37 {strides = array<i32>} : memref<4x256xf32, #tpu.memory_space<vmem>>, vector<4x256xf32>,
    } else {
    }
    %c0 = arith.constant 0 : index
    %c0_1 = arith.constant 0 : index
    %c0_2 = arith.constant 0 : index
    %3 = vector.load %arg2[%c0, %c0_1, %c0_2] : memref<1x4x256xf32, #tpu.memory_space<vmem>>, vector<1x4x256xf32>
    %4 = vector.shape_cast %3 : vector<1x4x256xf32> to vector<4x256xf32>
    %c0_3 = arith.constant 0 : index
    %c0_4 = arith.constant 0 : index
    %c0_5 = arith.constant 0 : index
    %5 = vector.load %arg3[%c0_3, %c0_4, %c0_5] : memref<1x4x256xf32, #tpu.memory_space<vmem>>, vector<1x4x256xf32>
    %6 = vector.shape_cast %5 : vector<1x4x256xf32> to vector<4x256xf32>
    %c0_6 = arith.constant 0 : index
    %c0_7 = arith.constant 0 : index
    %c0_8 = arith.constant 0 : index
    %7 = vector.load %arg4[%c0_6, %c0_7, %c0_8] : memref<1x1x1xf32, #tpu.memory_space<vmem>>, vector<1x1x1xf32>
    %8 = vector.shape_cast %7 : vector<1x1x1xf32> to vector<1x1xf32>
    %9 = vector.broadcast %8 : vector<1x1xf32> to vector<4x256xf32>
    %10 = arith.mulf %9, %4 : vector<4x256xf32>
    %c0_9 = arith.constant 0 : index
    %c0_10 = arith.constant 0 : index
    %c0_11 = arith.constant 0 : index
    %11 = vector.load %arg5[%c0_9, %c0_10, %c0_11] : memref<1x1x1xf32, #tpu.memory_space<vmem>>, vector<1x1x1xf32>
    %12 = vector.shape_cast %11 : vector<1x1x1xf32> to vector<1x1xf32>
    %13 = vector.broadcast %12 : vector<1x1xf32> to vector<4x256xf32>
    %14 = arith.mulf %13, %6 : vector<4x256xf32>
    %15 = arith.addf %10, %14 : vector<4x256xf32>
    %c0_12 = arith.constant 0 : index
    %c0_13 = arith.constant 0 : index
    %16 = vector.load %arg7[%c0_12, %c0_13] : memref<32x4xf32, #tpu.memory_space<vmem>>, vector<32x4xf32>
    %cst = arith.constant dense<0.000000e+00> : vector<32x256xf32>
    %17 = tpu.matmul %16, %15, %cst {dimension_numbers = #tpu.dot_dimension_numbers<[1], [0], [0], [1], [0, 0, 1, 1], [], []>} : vector<32x4xf32>, vector<4x256xf32>, vector<32x256xf32> -> vector<32x256xf32>
    %c0_14 = arith.constant 0 : index
    %c0_15 = arith.constant 0 : index
    %c0_16 = arith.constant 0 : index
    %18 = vector.load %arg6[%c0_14, %c0_15, %c0_16] : memref<1x32x1xf32, #tpu.memory_space<vmem>>, vector<1x32x1xf32>
    %19 = vector.shape_cast %18 : vector<1x32x1xf32> to vector<32x1xf32>
    %20 = vector.broadcast %19 : vector<32x1xf32> to vector<32x256xf32>
    %21 = arith.addf %17, %20 : vector<32x256xf32>
    %cst_17 = arith.constant 0.000000e+00 : f32
    %22 = vector.broadcast %cst_17 : f32 to vector<32x256xf32>
    %23 = arith.maximumf %21, %22 : vector<32x256xf32>
    %c0_18 = arith.constant 0 : index
    %c0_19 = arith.constant 0 : index
    %24 = vector.load %arg8[%c0_18, %c0_19] : memref<4x32xf32, #tpu.memory_space<vmem>>, vector<4x32xf32>
    %cst_20 = arith.constant dense<0.000000e+00> : vector<4x256xf32>
    %25 = tpu.matmul %24, %23, %cst_20 {dimension_numbers = #tpu.dot_dimension_numbers<[1], [0], [0], [1], [0, 0, 1, 1], [], []>} : vector<4x32xf32>, vector<32x256xf32>, vector<4x256xf32> -> vector<4x256xf32>
    %c0_21 = arith.constant 0 : index
    %c0_22 = arith.constant 0 : index
    %26 = vector.load %arg9[%c0_21, %c0_22] : memref<4x1xf32, #tpu.memory_space<vmem>>, vector<4x1xf32>
    %27 = vector.broadcast %26 : vector<4x1xf32> to vector<4x256xf32>
    %28 = arith.addf %25, %27 : vector<4x256xf32>
    %29 = arith.subf %28, %6 : vector<4x256xf32>
    %c0_23 = arith.constant 0 : index
    %c0_24 = arith.constant 0 : index
    %30 = vector.load %arg11[%c0_23, %c0_24] : memref<4x256xf32, #tpu.memory_space<vmem>>, vector<4x256xf32>
    %31 = arith.mulf %29, %29 : vector<4x256xf32>
    %32 = arith.addf %30, %31 : vector<4x256xf32>
    %c0_25 = arith.constant 0 : index
    %c0_26 = arith.constant 0 : index
    %33 = vector.load %arg11[%c0_25, %c0_26] : memref<4x256xf32, #tpu.memory_space<vmem>>, vector<4x256xf32>
    tpu.vector_store %arg11[%c0_25, %c0_26], %32 {strides = array<i32>} : memref<4x256xf32, #tpu.memory_space<vmem>>, vector<4x256xf32>,
    %c0_i32_27 = arith.constant 0 : i32
    %34 = arith.cmpi eq, %arg1, %c0_i32_27 : i32
    %35 = arith.extui %34 : i1 to i32
    %c0_i32_28 = arith.constant 0 : i32
    %36 = arith.cmpi ne, %35, %c0_i32_28 : i32
    scf.if %36 {
      %c0_29 = arith.constant 0 : index
      %c0_30 = arith.constant 0 : index
      %37 = vector.load %arg11[%c0_29, %c0_30] : memref<4x256xf32, #tpu.memory_space<vmem>>, vector<4x256xf32>
      %38 = vector.shape_cast %37 : vector<4x256xf32> to vector<1x4x256xf32>
      %cst_31 = arith.constant dense<0.000000e+00> : vector<1xf32>
      %39 = vector.multi_reduction <add>, %38, %cst_31 [1, 2] : vector<1x4x256xf32> to vector<1xf32>
      %40 = vector.shape_cast %39 : vector<1xf32> to vector<1x1x1xf32>
      %41 = vector.extract %40[0, 0, 0] : f32 from vector<1x1x1xf32>
      %42 = vector.broadcast %41 : f32 to vector<1x1xf32>
      %c0_32 = arith.constant 0 : index
      %c0_33 = arith.constant 0 : index
      %c0_34 = arith.constant 0 : index
      %43 = vector.load %arg10[%c0_32, %c0_33, %c0_34] : memref<1x1x1xf32, #tpu.memory_space<vmem>>, vector<1x1x1xf32>
      %44 = vector.shape_cast %43 : vector<1x1x1xf32> to vector<1x1xf32>
      %45 = vector.shape_cast %42 : vector<1x1xf32> to vector<1x1x1xf32>
      tpu.vector_store %arg10[%c0_32, %c0_33, %c0_34], %45 {strides = array<i32>} : memref<1x1x1xf32, #tpu.memory_space<vmem>>, vector<1x1x1xf32>,
    } else {
    }
    return
  }
  func.func @transform_0(%arg0: i32, %arg1: i32) -> (i32, i32, i32) {
    %c0_i32 = arith.constant 0 : i32
    %c0_i32_0 = arith.constant 0 : i32
    return %arg0, %c0_i32, %arg1 : i32, i32, i32
  }
  func.func @transform_1(%arg0: i32, %arg1: i32) -> (i32, i32, i32) {
    %c0_i32 = arith.constant 0 : i32
    %c0_i32_0 = arith.constant 0 : i32
    return %arg0, %c0_i32, %arg1 : i32, i32, i32
  }
  func.func @transform_2(%arg0: i32, %arg1: i32) -> (i32, i32, i32) {
    %c0_i32 = arith.constant 0 : i32
    %c0_i32_0 = arith.constant 0 : i32
    %c0_i32_1 = arith.constant 0 : i32
    return %arg0, %c0_i32, %c0_i32_0 : i32, i32, i32
  }
  func.func @transform_3(%arg0: i32, %arg1: i32) -> (i32, i32, i32) {
    %c0_i32 = arith.constant 0 : i32
    %c0_i32_0 = arith.constant 0 : i32
    %c0_i32_1 = arith.constant 0 : i32
    return %arg0, %c0_i32, %c0_i32_0 : i32, i32, i32
  }
  func.func @transform_4(%arg0: i32, %arg1: i32) -> (i32, i32, i32) {
    %c0_i32 = arith.constant 0 : i32
    %c0_i32_0 = arith.constant 0 : i32
    %c0_i32_1 = arith.constant 0 : i32
    return %arg0, %c0_i32, %c0_i32_0 : i32, i32, i32
  }
  func.func @transform_5(%arg0: i32, %arg1: i32) -> (i32, i32) {
    %c0_i32 = arith.constant 0 : i32
    %c0_i32_0 = arith.constant 0 : i32
    %c0_i32_1 = arith.constant 0 : i32
    return %c0_i32, %c0_i32_0 : i32, i32
  }
  func.func @transform_6(%arg0: i32, %arg1: i32) -> (i32, i32) {
    %c0_i32 = arith.constant 0 : i32
    %c0_i32_0 = arith.constant 0 : i32
    %c0_i32_1 = arith.constant 0 : i32
    return %c0_i32, %c0_i32_0 : i32, i32
  }
  func.func @transform_7(%arg0: i32, %arg1: i32) -> (i32, i32) {
    %c0_i32 = arith.constant 0 : i32
    %c0_i32_0 = arith.constant 0 : i32
    %c0_i32_1 = arith.constant 0 : i32
    return %c0_i32, %c0_i32_0 : i32, i32
  }
  func.func @transform_8(%arg0: i32, %arg1: i32) -> (i32, i32, i32) {
    %c0_i32 = arith.constant 0 : i32
    %c0_i32_0 = arith.constant 0 : i32
    %c0_i32_1 = arith.constant 0 : i32
    return %arg0, %c0_i32, %c0_i32_0 : i32, i32, i32
  }
}

</mosaic_0001>

<bundles_post_ra>
// kernel: classifier_free_ddpm_loss.3
= control target key start
LH: loop header
LB: loop body
LE: loop exit
PB: predicated region body
PF: predicated region fallthrough
CT: control target
= control target key end

     0   :  { %s944_s27 = smov 0   ;;  %s946_s28 = smov 0   ;;  %s1024_s0 = inlined_call_operand.vmem [shape: f32[2,4,256], index: 0, kind: input, shape index: {}]   ;;  %s1025_s1 = inlined_call_operand.vmem [shape: f32[2,4,256], index: 1, kind: input, shape index: {}]   ;;  %s1026_s2 = inlined_call_operand.vmem [shape: f32[2,1,1], index: 2, kind: input, shape index: {}]   ;;  %s1027_s3 = inlined_call_operand.vmem [shape: f32[2,1,1], index: 3, kind: input, shape index: {}]   ;;  %s1028_s4 = inlined_call_operand.vmem [shape: f32[2,32,1], index: 4, kind: input, shape index: {}]   ;;  %s1029_s5 = inlined_call_operand.vmem [shape: f32[32,4], index: 5, kind: input, shape index: {}]   ;;  %s1030_s6 = inlined_call_operand.vmem [shape: f32[4,32], index: 6, kind: input, shape index: {}]   ;;  %s1031_s7 = inlined_call_operand.vmem [shape: f32[4,1], index: 7, kind: input, shape index: {}]   ;;  %s1032_s8 = inlined_call_operand.vmem [shape: f32[2,1,1], index: 8, kind: output, shape index: {}]  }
   0x1   :  { %s948_s29 = smov 0  }
   0x2 LB: > { %s30_s30 = sadd.s32 1, %s891_s28  ;;  %p820_p0 = scmp.ge.s32.totalorder %s895_s29, 1  ;;  %s895_s29 = sphi %s948_s29, %s18_s29   ;;  %s891_s28 = sphi %s946_s28, %s1034_s28   ;;  %s887_s27 = sphi %s944_s27, %s1033_s27  }
   0x3   : > { %p32_p1 = scmp.ge.s32.totalorder %s30_s30, 2  ;;  %p324_p2 = scmp.lt.s32.totalorder %s895_s29, 3 }
   0x5   : > { %s1036_s30 = smov (%p32_p1, %s30_s30), 0  ;;  %p325_p3 = pnand %p820_p0, %p324_p2 }
   0x6   : > { %p381_p4 = scmp.lt.s32.totalorder (!%p325_p3), %s887_s27, 1 }
   0x7   : > { %328 = sbr.rel (%p325_p3) target bundleno = 778 (0x30a), region = 52 }
   0xc   : > { %v897_v0 = vmov 0   ;;  %s1038_s27 = smov (!%p381_p4, %s887_s27), 1  ;;  %v898_v4 = vmov 0.0   ;;  %v590_v5 = vld [vmem:[%s1031_s7] sm:$0xf]  ;;  %vm487_vm0 = vcmask 1043456  }
   0xd   : > { %870 = vset.pattern.permute.xlu0 %v897_v0  ;;  %871 = vset.pattern.permute.xlu1 %v897_v0  ;;  %s402_s11 = scalar_lea.vmem %s1026_s2, %s1038_s27  ;;  %s405_s14 = scalar_lea.vmem %s1027_s3, %s1038_s27  ;;  %v444_v17 = vld [vmem:[%s1029_s5] sm:$0xff]  ;;  %vm474_vm1 = vcmask 31744   ;;  %v445_v18 = vld [vmem:[%s1029_s5 + $0x8] sm:$0xff]  ;;  %v446_v19 = vld [vmem:[%s1029_s5 + $0x10] sm:$0xff]  ;;  %vm596_vm2 = vcmask 261120   ;;  %vm705_vm3 = vcmask 0  }
   0xe   : > { %v827_v1 = vld [vmem:[%s402_s11] ss:$0 sm:$0xff]  ;;  %s840_s15 = sshll.u32 %s1038_s27, 5  ;;  %556 = vmatprep.mubr.f32.mxu0 %v898_v4  ;;  %664 = vmatprep.mubr.f32.mxu1 %v898_v4  ;;  %s838_s21 = sshll.u32 %s1038_s27, 3  ;;  %v447_v20 = vld [vmem:[%s1029_s5 + $0x18] sm:$0xff] }
   0xf   : > { %428 = vperm.xlu0 %870, %v827_v1   ;;  %v828_v2 = vld [vmem:[%s405_s14] ss:$0 sm:$0xff]  ;;  %s410_s18 = scalar_lea.vmem %s1028_s4, %s840_s15  ;;  %s388_s24 = scalar_lea.vmem %s1024_s0, %s838_s21 }
  0x10   : > { %v449_v3 = vld [vmem:[%s410_s18 + $0x8] sm:$0xff]  ;;  %v451_v6 = vld [vmem:[%s410_s18 + $0x18] sm:$0xff]  ;;  %v450_v7 = vld [vmem:[%s410_s18 + $0x10] sm:$0xff]  ;;  %s398_s9 = scalar_lea.vmem %s1025_s1, %s838_s21  ;;  %s413_s22 = scalar_lea.vmem %s1032_s8, %s1038_s27 }
  0x11   : > { %469 = vperm.xlu1 %871, %v451_v6   ;;  %v448_v8 = vld [vmem:[%s410_s18] sm:$0xff] }
  0x12   : > { %v419_v10 = vld [vmem:[%s388_s24] sm:$0xff] }
  0x13   : > { %439 = vperm.xlu0 %870, %v828_v2   ;;  %v986_v11 = vld [vmem:[%s398_s9] sm:$0xff] }
  0x14   : > { %v589_v49 = vld [vmem:[%s1030_s6] sm:$0xf]  ;;  %v672_v53 = vcombine.high %v986_v11, %v986_v11 }
  0x15   : > { %464 = vperm.xlu1 %871, %v450_v7  }
  0x17   : > { %459 = vperm.xlu0 %870, %v449_v3  }
  0x19   : > { %454 = vperm.xlu1 %871, %v448_v8  }
  0x1b   : > { %593 = vperm.xlu0 %870, %v590_v5  }
  0x8a   : > { %v429_v9 = vpop.permute.xlu0 %428 }
  0x8b   : > { %v431_v13 = vmul.f32 %v429_v9, %v419_v10 }
  0x8c   : > { %v470_v24 = vpop.permute.xlu1 %469 }
  0x8e   : > { %v440_v12 = vpop.permute.xlu0 %439 }
  0x8f   : > { %v442_v14 = vmul.f32 %v440_v12, %v986_v11 }
  0x90   : > { %v465_v28 = vpop.permute.xlu1 %464 }
  0x91   : > { %v443_v15 = vadd.f32 %v442_v14, %v431_v13 }
  0x92   : > { %v460_v34 = vpop.permute.xlu0 %459 }
  0x93   : > { %v473_v16 = vcombine.high %v443_v15, %v443_v15 }
  0x94   : > { %v455_v36 = vpop.permute.xlu1 %454 }
  0x95   : > { %829 = vmatprep.subr.msk.mxu0 %vm487_vm0, %v473_v16 }
  0x96   : > { %830 = vmatpush1.msk.msra.mxu0 %vm487_vm0, %v443_v15  ;;  %v594_v50 = vpop.permute.xlu0 %593 }
  0x97   : > { %831 = vmatmul.mubr.msk.f32.vlgmr.msra.gmra.mxu0 %vm474_vm1, %v444_v17 }
  0x98   : > { %562 = vmatprep.mubr.f32.mxu0 %v898_v4 }
  0x9b   : > { %832 = vmatmul.mubr.msk.f32.gmra.mxu0 %vm474_vm1, %v445_v18 }
  0x9c   : > { %568 = vmatprep.mubr.f32.mxu0 %v898_v4 }
  0x9f   : > { %833 = vmatmul.mubr.msk.f32.gmra.mxu0 %vm474_vm1, %v446_v19 }
  0xa0   : > { %574 = vmatprep.mubr.f32.mxu0 %v898_v4 }
  0xa3   : > { %834 = vmatmul.mubr.msk.f32.gmra.mxu0 %vm474_vm1, %v447_v20 }
 0x157   : > { %v558_v21 = vpop.f32.mrf.mxu0 }
 0x158   : > { %v559_v43 = vadd.f32 %v558_v21, %v455_v36 }
 0x159   : > { %v560_v22 = vpop.f32.mrf.mxu0 }
 0x15a   : > { %v561_v41 = vadd.f32 %v560_v22, %v455_v36  ;;  %v581_v48 = vmax.f32 %v559_v43, 0.0 }
 0x15b   : > { %v564_v23 = vpop.f32.mrf.mxu0 }
 0x15c   : > { %v565_v39 = vadd.f32 %v564_v23, %v460_v34  ;;  %v582_v47 = vmax.f32 %v561_v41, 0.0 }
 0x15d   : > { %v566_v25 = vpop.f32.mrf.mxu0 }
 0x15e   : > { %v567_v37 = vadd.f32 %v566_v25, %v460_v34  ;;  %v583_v46 = vmax.f32 %v565_v39, 0.0 }
 0x15f   : > { %v570_v26 = vpop.f32.mrf.mxu0 }
 0x160   : > { %v571_v35 = vadd.f32 %v570_v26, %v465_v28  ;;  %v584_v45 = vmax.f32 %v567_v37, 0.0 }
 0x161   : > { %v572_v27 = vpop.f32.mrf.mxu0 }
 0x162   : > { %v573_v32 = vadd.f32 %v572_v27, %v465_v28  ;;  %v585_v44 = vmax.f32 %v571_v35, 0.0 }
 0x163   : > { %v576_v29 = vpop.f32.mrf.mxu0 }
 0x164   : > { %v577_v30 = vadd.f32 %v576_v29, %v470_v24  ;;  %v586_v42 = vmax.f32 %v573_v32, 0.0 }
 0x165   : > { %v578_v31 = vpop.f32.mrf.mxu0 }
 0x166   : > { %v579_v33 = vadd.f32 %v578_v31, %v470_v24  ;;  %v587_v40 = vmax.f32 %v577_v30, 0.0 }
 0x168   : > { %v588_v38 = vmax.f32 %v579_v33, 0.0 }
 0x16a   : > { %624 = vmatprep.subr.mxu1 %v588_v38 }
 0x16b   : > { %625 = vmatpush1.msra.mxu1 %v587_v40 }
 0x16c   : > { %626 = vmatprep.subr.mxu1 %v586_v42 }
 0x16d   : > { %627 = vmatpush1.msra.mxu1 %v585_v44 }
 0x16e   : > { %628 = vmatprep.subr.mxu1 %v584_v45 }
 0x16f   : > { %629 = vmatpush1.msra.mxu1 %v583_v46 }
 0x170   : > { %630 = vmatprep.subr.mxu1 %v582_v47 }
 0x171   : > { %631 = vmatpush1.msra.mxu1 %v581_v48 }
 0x172   : > { %835 = vmatmul.mubr.msk.f32.vlgmr.msra.gmra.mxu1 %vm596_vm2, %v589_v49 }
 0x232   : > { %v666_v51 = vpop.f32.mrf.mxu1 }
 0x233   : > { %v667_v52 = vadd.f32 %v666_v51, %v594_v50 }
 0x234   : > { %v668_v54 = vpop.f32.mrf.mxu1 }
 0x235   : > { %v674_v55 = vsub.f32 %v667_v52, %v986_v11  ;;  %v669_v56 = vadd.f32 %v668_v54, %v594_v50 }
 0x237   : > { %v675_v57 = vsub.f32 %v669_v56, %v672_v53  ;;  %v677_v58 = vmul.f32 %v674_v55, %v674_v55 }
 0x239   : > { %v678_v59 = vmul.f32 %v675_v57, %v675_v57 }
 0x23b   : > { %v681_v60 = vcombine.low %v677_v58, %v678_v59  ;;  %v841_v61 = vcombine.low %v678_v59, %v678_v59 }
 0x23d   : > { %v692_v62 = vsel %vm487_vm0, %v681_v60, 0.0  ;;  %v693_v63 = vsel %vm487_vm0, %v841_v61, 0.0 }
 0x23e   : > { %v694_v0 = vadd.f32 %v693_v63, %v692_v62 }
 0x240   : > { %695 = vadd.xlane.f32.xlu1 %v694_v0 }
 0x2c9   : > { %v696_v1 = vpop.xlane.xlu1 %695 }
 0x2ca   : > { %v697_v2 = vrot.slane %v696_v1, 4 }
 0x2cc   : > { %v698_v3 = vadd.f32 %v697_v2, %v696_v1 }
 0x2ce   : > { %v699_v4 = vrot.slane %v698_v3, 2 }
 0x2d0   : > { %v700_v5 = vadd.f32 %v699_v4, %v698_v3 }
 0x2d2   : > { %v701_v6 = vrot.slane %v700_v5, 1 }
 0x2d4   : > { %v702_v7 = vadd.f32 %v701_v6, %v700_v5 }
 0x2d6   : > { %842 = vpush %v702_v7 }
 0x307   : > { %s843_s23 = spop %842 }
 0x308   : > { %v704_v8 = vstv %s843_s23 }
 0x309   : > { %706 = vst.msk [vmem:[%s413_s22] sm:$0x1] %vm705_vm3, %v704_v8 }
 0x30a PF: > { %s18_s29 = sadd.s32 1, %s895_s29   ;;  %s1033_s27 = smov %s891_s28 }
 0x30b   : > { %p15_p5 = scmp.ge.s32.totalorder %s18_s29, 4   ;;  %s1034_s28 = smov %s1036_s30 }
 0x30d   :  { %17 = sbr.rel (!%p15_p5) target bundleno = 2 (0x2), region = 102 }

</bundles_post_ra>
